<compile_context>
chip_gen: v6e
topology: v6e:2x2x1
jax: 0.10.0
libtpu: 0.0.40
codegen_flags: <defaults>
</compile_context>

<pallas_src>
import functools

import jax
import jax.numpy as jnp
from jax.experimental import pallas as pl
from jax.experimental.pallas import tpu as pltpu


# ------------------------- Pallas kernels -------------------------

def _dists_kernel(means_ref, x_ref, o_ref):
    # means_ref: (1, nc, d)     cluster means for this head
    # x_ref:     (1, 1, tT, d)  RAW (unnormalized) tokens tile for one (b, h)
    # o_ref:     (1, 1, nc, tT) cluster->token similarities (lane-dense over tokens)
    m = means_ref[0].astype(jnp.float32)                       # (nc, d)
    x = x_ref[0, 0].astype(jnp.float32)                        # (tT, d)
    # fused F.normalize(x, p=2, dim=-1): rsqrt lands on the EUP slot; the clamp matches
    # the torch eps=1e-12 on the norm (1e-24 on the squared norm).
    sq = jnp.sum(x * x, axis=-1, keepdims=True)
    xn = x * jax.lax.rsqrt(jnp.maximum(sq, 1e-24))
    # contract on d; output (nc, tT): tokens on the lane axis -> unmasked stores.
    o_ref[0, 0] = jax.lax.dot_general(
        m, xn,
        dimension_numbers=(((1,), (1,)), ((), ())),
        preferred_element_type=jnp.float32)


def _pick_t_tile(T, d, nc, itemsize, budget_bytes=12 << 20, max_tile=8192):
    # per grid step (double-buffered): x tile 2*tT*d*itemsize + out tile 2*nc*tT*4 bytes.
    if T <= max_tile or T % 128 != 0:
        return T
    per_token = 2 * d * itemsize + 2 * nc * 4
    cap = min(max_tile, max(128, (budget_bytes // max(per_token, 1)) // 128 * 128))
    tile = cap
    while tile >= 128:
        if T % tile == 0:
            return tile
        tile -= 128
    return T


def kmeans_dists(x, means, *, vmem_limit_bytes=48 << 20):
    # x: (b, h, T, d) RAW tokens, means: (h, nc, d) -> dists: (b, h, nc, T) in f32.
    b, h, T, d = x.shape
    nc = means.shape[1]
    x_item = jnp.dtype(x.dtype).itemsize
    m_item = jnp.dtype(means.dtype).itemsize
    tT = _pick_t_tile(T, d, nc, x_item)
    n_t = T // tT
    cost = pl.CostEstimate(
        flops=2 * b * h * T * d * (nc + 1),                    # normalize + matmul
        transcendentals=b * h * T,                             # rsqrt per token
        bytes_accessed=(b * h * T * d * x_item                 # x read
                        + b * n_t * h * nc * d * m_item        # means re-read per step
                        + b * h * nc * T * 4),                 # dists written
    )
    return pl.pallas_call(
        _dists_kernel,
        out_shape=jax.ShapeDtypeStruct((b, h, nc, T), jnp.float32),
        grid=(b, h, n_t),
        in_specs=[
            pl.BlockSpec((1, nc, d), lambda i, j, kt: (j, 0, 0)),
            pl.BlockSpec((1, 1, tT, d), lambda i, j, kt: (i, j, kt, 0)),
        ],
        out_specs=pl.BlockSpec((1, 1, nc, tT), lambda i, j, kt: (i, j, 0, kt)),
        compiler_params=pltpu.CompilerParams(
            dimension_semantics=("parallel", "parallel", "parallel"),
            vmem_limit_bytes=vmem_limit_bytes),
        cost_estimate=cost,
    )(means, x)


def _cluster_attn_kernel(q_ref, k_ref, v_ref, o_ref, *, scale):
    # One (b, h) head, a tile of `ct` clusters (cluster-batched MXU work).
    # q_ref: (1, ct, wsz, d); k_ref/v_ref: (1, ct, kv_wsz, d); o_ref: (1, ct, wsz, d)
    q = q_ref[0] * scale                         # scale folded into q; stays in input dtype
    k = k_ref[0]
    v = v_ref[0]
    # batched over clusters, contract d; no explicit k transpose; f32 accumulation.
    dots = jnp.einsum('nqd,nkd->nqk', q, k,
                      preferred_element_type=jnp.float32)      # (ct, wsz, kv_wsz) f32
    # softmax kept lean + in f32 (kernel is EUP/exp-bound at small d on v6e/v7x; v5e has
    # no bf16 VPU/EUP so f32 elementwise is the right choice everywhere).
    dots = dots - jnp.max(dots, axis=-1, keepdims=True)
    p = jnp.exp(dots)
    denom = jnp.sum(p, axis=-1, keepdims=True)
    p = (p * pl.reciprocal(denom, approx=True)).astype(v.dtype)  # EUP recip, MXU-dtype probs
    out = jnp.einsum('nqk,nkd->nqd', p, v,
                     preferred_element_type=jnp.float32)       # (ct, wsz, d) f32
    o_ref[0] = out.astype(o_ref.dtype)
    # NOTE: with d < 128 the loads/stores are lane-masked; acceptable since the kernel is
    # EUP/MXU-bound, not store-bound.


def _pick_cluster_tile(BH, nc, wsz, kv_wsz, d, in_item, out_item, budget_bytes=12 << 20):
    # VMEM per cluster in one grid step: double-buffered q/k/v/o blocks + f32 logits,
    # probabilities and f32 output before the final cast.
    per_cluster = (2 * (wsz * d * in_item + 2 * kv_wsz * d * in_item + wsz * d * out_item)
                   + 2 * wsz * kv_wsz * 4
                   + wsz * d * 4)
    ct = max(1, min(nc, budget_bytes // max(per_cluster, 1)))
    while nc % ct != 0:
        ct -= 1
    # v7x has 2 TensorCores: prefer an even number of parallel grid steps.
    if (BH * (nc // ct)) % 2 == 1:
        for cand in range(ct, 0, -1):
            if nc % cand == 0 and (BH * (nc // cand)) % 2 == 0:
                ct = cand
                break
    return ct


def cluster_attention(qg, kg, vg, scale, *, vmem_limit_bytes=48 << 20):
    # qg: (BH, nc, wsz, d), kg/vg: (BH, nc, kv_wsz, d) where BH = b*h
    BH, nc, wsz, d = qg.shape
    kv_wsz = kg.shape[2]
    in_item = jnp.dtype(qg.dtype).itemsize
    out_dtype = qg.dtype
    out_item = jnp.dtype(out_dtype).itemsize
    ct = _pick_cluster_tile(BH, nc, wsz, kv_wsz, d, in_item, out_item)
    kernel = functools.partial(_cluster_attn_kernel, scale=scale)
    cost = pl.CostEstimate(
        flops=4 * BH * nc * wsz * kv_wsz * d,                  # QK^T + PV matmuls
        transcendentals=BH * nc * wsz * kv_wsz,                # exp
        bytes_accessed=(BH * nc * (wsz + 2 * kv_wsz) * d * in_item   # q, k, v read
                        + BH * nc * wsz * d * out_item),             # o written
    )
    return pl.pallas_call(
        kernel,
        out_shape=jax.ShapeDtypeStruct((BH, nc, wsz, d), out_dtype),
        grid=(BH, nc // ct),
        in_specs=[
            pl.BlockSpec((1, ct, wsz, d), lambda i, c: (i, c, 0, 0)),
            pl.BlockSpec((1, ct, kv_wsz, d), lambda i, c: (i, c, 0, 0)),
            pl.BlockSpec((1, ct, kv_wsz, d), lambda i, c: (i, c, 0, 0)),
        ],
        out_specs=pl.BlockSpec((1, ct, wsz, d), lambda i, c: (i, c, 0, 0)),
        compiler_params=pltpu.CompilerParams(
            dimension_semantics=("parallel", "parallel"),
            vmem_limit_bytes=vmem_limit_bytes),
        cost_estimate=cost,
    )(qg, kg, vg)


# ------------------------- plain-JAX glue -------------------------

def distribution(dists, window_size):
    # dists: (b, h, nc, T) -> per-cluster top-`window_size` token indices: (b, h, nc*window_size)
    b, h, nc, T = dists.shape
    if T >= 128 and window_size < T:
        # TPU-optimized partial-reduction path; exact top_k lowers to a full sort.
        _, idx = jax.lax.approx_max_k(dists, window_size, recall_target=0.95)
    else:
        _, idx = jax.lax.top_k(dists, window_size)
    return idx.reshape(b, h, nc * window_size)


def batched_index_select(values, indices):
    # values: (b, h, t, d), indices: (b, h, n) -> (b, h, n, d)
    return jnp.take_along_axis(values, indices[..., None], axis=2)


def scatter_mean(src, upd, index, eps=1e-5):
    # scatter-add `upd` into `src` along dim -2 at `index`, then divide by counts.
    # Counts accumulated at width 1 and broadcast at the divide (d x less traffic).
    b, h, n, d = upd.shape
    bi = jnp.arange(b)[:, None, None]
    hi = jnp.arange(h)[None, :, None]
    numer = src.at[bi, hi, index].add(upd.astype(src.dtype))
    counts = jnp.zeros(src.shape[:-1] + (1,), dtype=src.dtype)
    counts = counts.at[bi, hi, index].add(jnp.ones(upd.shape[:-1] + (1,), dtype=src.dtype))
    return numer / (counts + eps)


def kmeans_attention_forward(params, q, k, v, *, num_clusters, window_size,
                             commitment=1e-4, attn_dtype=jnp.bfloat16):
    b, h, t, d = q.shape
    kv_t = k.shape[2]
    nc = num_clusters
    wsz = min(window_size, t)
    kv_wsz = min(window_size, kv_t)
    means = params["kmeans_means"]                   # (h, nc, d)

    # ---- Kmeans.forward (eval; no EMA update) ----
    # Normalization fused into the Pallas kernel; q||k concat never materialized.
    q_dists = kmeans_dists(q, means)                 # (b, h, nc, t), f32, lane-dense tokens
    k_dists = kmeans_dists(k, means)                 # (b, h, nc, kv_t)

    # commitment loss = mse(x_norm, means[bucket]) * commitment, expanded algebraically:
    # per token: ||x_norm||^2 - 2 <x_norm, mean_bucket> + ||mean_bucket||^2
    #          = 1 - 2*max_c dists[..,c,tok] + ||mean_bucket||^2   (||x|| > eps always here)
    means_sq = jnp.sum(means.astype(jnp.float32) ** 2, axis=-1)          # (h, nc)
    hi = jnp.arange(h)[None, :, None]

    def _loss_sum(dists):
        maxd = jnp.max(dists, axis=2)                                    # (b, h, T)
        bucket = jnp.argmax(dists, axis=2)                               # (b, h, T)
        msq = means_sq[hi, bucket]                                       # (b, h, T)
        return jnp.sum(1.0 - 2.0 * maxd + msq)

    aux_loss = ((_loss_sum(q_dists) + _loss_sum(k_dists))
                / (b * h * (t + kv_t) * d)) * commitment

    indices = distribution(q_dists, wsz)             # (b, h, nc*wsz)
    kv_indices = distribution(k_dists, kv_wsz)       # (b, h, nc*kv_wsz)

    # TODO(synk): fuse this gather into the attention kernel (scalar-prefetch indices in SMEM
    # + manual DMA row gathers from HBM) to remove one full write+read of the gathered slabs.
    # The bf16 cast is fused by XLA into the gather output to halve its HBM footprint.
    qg = batched_index_select(q, indices).astype(attn_dtype).reshape(b * h, nc, wsz, d)
    kg = batched_index_select(k, kv_indices).astype(attn_dtype).reshape(b * h, nc, kv_wsz, d)
    vg = batched_index_select(v, kv_indices).astype(attn_dtype).reshape(b * h, nc, kv_wsz, d)

    # ---- clustered attention (Pallas hot path, cluster-tiled per grid step) ----
    scale = d ** -0.5
    bo = cluster_attention(qg, kg, vg, scale).reshape(b, h, nc * wsz, d)  # bf16 payload

    # ---- scatter results back to original token positions (f32 accumulation) ----
    out = jnp.zeros(q.shape, dtype=jnp.float32)
    out = scatter_mean(out, bo, indices)
    return out.astype(q.dtype), aux_loss


# ------------------------- driver -------------------------

if __name__ == "__main__":
    key = jax.random.PRNGKey(0)
    b, h, t, d = 2, 2, 16, 16        # batch, num_heads, seq, head_dim
    num_clusters, window_size = 4, 8

    kq, kk, kv_key, km = jax.random.split(key, 4)
    q = jax.random.normal(kq, (b, h, t, d), dtype=jnp.float32)
    k = jax.random.normal(kk, (b, h, t, d), dtype=jnp.float32)
    v = jax.random.normal(kv_key, (b, h, t, d), dtype=jnp.float32)

    # Kmeans `means` buffer: torch.randn(num_heads, num_clusters, head_dim)
    params = {"kmeans_means": jax.random.normal(km, (h, num_clusters, d),
                                                dtype=jnp.float32)}

    out, aux_loss = kmeans_attention_forward(
        params, q, k, v, num_clusters=num_clusters, window_size=window_size)
    jax.block_until_ready((out, aux_loss))

    assert out.shape == (b, h, t, d) and out.dtype == q.dtype
    assert aux_loss.shape == ()
    assert bool(jnp.all(jnp.isfinite(out))) and bool(jnp.isfinite(aux_loss))
    print("KERNEL_OK")
</pallas_src>

<mosaic_0001>
module attributes {stable_mosaic.version = 11 : i64} {
  func.func @_dists_kernel(%arg0: i32, %arg1: i32, %arg2: i32, %arg3: memref<1x4x16xf32, #tpu.memory_space<vmem>>, %arg4: memref<1x1x16x16xf32, #tpu.memory_space<vmem>>, %arg5: memref<1x1x4x16xf32, #tpu.memory_space<vmem>>) attributes {dimension_semantics = [#tpu.dimension_semantics<parallel>, #tpu.dimension_semantics<parallel>, #tpu.dimension_semantics<parallel>], iteration_bounds = array<i64: 2, 2, 1>, scalar_prefetch = 0 : i64, scratch_operands = 0 : i64, tpu.core_type = #tpu.core_type<tc>, window_params = [{transform_indices = @transform_0, window_bounds = array<i64: 1, 4, 16>}, {transform_indices = @transform_1, window_bounds = array<i64: 1, 1, 16, 16>}, {transform_indices = @transform_2, window_bounds = array<i64: 1, 1, 4, 16>}]} {
    %c0 = arith.constant 0 : index
    %c0_0 = arith.constant 0 : index
    %c0_1 = arith.constant 0 : index
    %0 = vector.load %arg3[%c0, %c0_0, %c0_1] : memref<1x4x16xf32, #tpu.memory_space<vmem>>, vector<1x4x16xf32>
    %1 = vector.shape_cast %0 : vector<1x4x16xf32> to vector<4x16xf32>
    %c0_2 = arith.constant 0 : index
    %c0_3 = arith.constant 0 : index
    %c0_4 = arith.constant 0 : index
    %c0_5 = arith.constant 0 : index
    %2 = vector.load %arg4[%c0_2, %c0_3, %c0_4, %c0_5] : memref<1x1x16x16xf32, #tpu.memory_space<vmem>>, vector<1x1x16x16xf32>
    %3 = vector.shape_cast %2 : vector<1x1x16x16xf32> to vector<16x16xf32>
    %4 = arith.mulf %3, %3 : vector<16x16xf32>
    %cst = arith.constant dense<0.000000e+00> : vector<16xf32>
    %5 = vector.multi_reduction <add>, %4, %cst [1] : vector<16x16xf32> to vector<16xf32>
    %6 = vector.shape_cast %5 : vector<16xf32> to vector<16x1xf32>
    %cst_6 = arith.constant 1.000000e-24 : f32
    %7 = vector.broadcast %cst_6 : f32 to vector<16x1xf32>
    %8 = arith.maximumf %6, %7 : vector<16x1xf32>
    %9 = math.rsqrt %8 : vector<16x1xf32>
    %10 = vector.broadcast %9 : vector<16x1xf32> to vector<16x16xf32>
    %11 = arith.mulf %3, %10 : vector<16x16xf32>
    %cst_7 = arith.constant dense<0.000000e+00> : vector<4x16xf32>
    %12 = tpu.matmul %1, %11, %cst_7 {dimension_numbers = #tpu.dot_dimension_numbers<[1], [1], [0], [0], [0, 0, 1, 0], [], []>} : vector<4x16xf32>, vector<16x16xf32>, vector<4x16xf32> -> vector<4x16xf32>
    %c0_8 = arith.constant 0 : index
    %c0_9 = arith.constant 0 : index
    %c0_10 = arith.constant 0 : index
    %c0_11 = arith.constant 0 : index
    %13 = vector.load %arg5[%c0_8, %c0_9, %c0_10, %c0_11] : memref<1x1x4x16xf32, #tpu.memory_space<vmem>>, vector<1x1x4x16xf32>
    %14 = vector.shape_cast %13 : vector<1x1x4x16xf32> to vector<4x16xf32>
    %15 = vector.shape_cast %12 : vector<4x16xf32> to vector<1x1x4x16xf32>
    tpu.vector_store %arg5[%c0_8, %c0_9, %c0_10, %c0_11], %15 {strides = array<i32>} : memref<1x1x4x16xf32, #tpu.memory_space<vmem>>, vector<1x1x4x16xf32>,
    return
  }
  func.func @transform_0(%arg0: i32, %arg1: i32, %arg2: i32) -> (i32, i32, i32) {
    %c0_i32 = arith.constant 0 : i32
    %c0_i32_0 = arith.constant 0 : i32
    %c0_i32_1 = arith.constant 0 : i32
    return %arg1, %c0_i32, %c0_i32_0 : i32, i32, i32
  }
  func.func @transform_1(%arg0: i32, %arg1: i32, %arg2: i32) -> (i32, i32, i32, i32) {
    %c0_i32 = arith.constant 0 : i32
    %c0_i32_0 = arith.constant 0 : i32
    return %arg0, %arg1, %arg2, %c0_i32 : i32, i32, i32, i32
  }
  func.func @transform_2(%arg0: i32, %arg1: i32, %arg2: i32) -> (i32, i32, i32, i32) {
    %c0_i32 = arith.constant 0 : i32
    %c0_i32_0 = arith.constant 0 : i32
    return %arg0, %arg1, %c0_i32, %arg2 : i32, i32, i32, i32
  }
}

</mosaic_0001>

<bundles_post_ra>
// kernel: tpu_custom_call.1
= control target key start
LH: loop header
LB: loop body
LE: loop exit
PB: predicated region body
PF: predicated region fallthrough
CT: control target
= control target key end

     0   :  { %s1067_s0 = inlined_call_operand.hbm [shape: f32[2,4,16], index: 0, kind: input, shape index: {}]   ;;  %s1068_s1 = inlined_call_operand.hbm [shape: f32[2,2,16,16], index: 1, kind: input, shape index: {}]   ;;  %s1069_s2 = inlined_call_operand.hbm [shape: f32[2,2,4,16], index: 2, kind: output, shape index: {}]  }
   0x1   :  { %1077 = sst [smem:[#allocation18_spill]] %s1067_s0 }
   0x2   :  { %7 = vsyncpa [#allocation3], 0 }
   0x3   :  { %9 = vsyncpa [#allocation3 + $0x1], 0 }
   0x4   :  { %10 = vsyncpa [#allocation6], 0 }
   0x5   :  { %12 = vsyncpa [#allocation6 + $0x1], 0 }
   0x6   :  { %13 = vsyncpa [#allocation4], 0 }
   0x7   :  { %15 = vsyncpa [#allocation4 + $0x1], 0  ;;  %s813_s9 = smov 0   ;;  %s815_s10 = smov 0  }
   0x8   :  { %s817_s11 = smov 0   ;;  %s819_s12 = smov 0  }
   0x9   :  { %s821_s13 = smov 0   ;;  %s823_s14 = smov 0  }
   0xa   :  { %s825_s15 = smov 0   ;;  %s827_s16 = smov 0  }
   0xb   :  { %s829_s17 = smov 0   ;;  %s831_s18 = smov 0  }
   0xc   :  { %s833_s19 = smov 0  }
   0xd LB: > { %1078 = sst [smem:[#allocation11_spill]] %s769_s14  ;;  %s462_s20 = sadd.s32 4294967295, %s789_s19   ;;  %s789_s19 = sphi %s833_s19, %s21_s19   ;;  %s785_s18 = sphi %s831_s18, %s1105_s18   ;;  %s781_s17 = sphi %s829_s17, %s1104_s17   ;;  %s777_s16 = sphi %s827_s16, %s1103_s16   ;;  %s773_s15 = sphi %s825_s15, %s1102_s15   ;;  %s769_s14 = sphi %s823_s14, %s1101_s14   ;;  %s765_s13 = sphi %s821_s13, %s1110_s13   ;;  %s761_s12 = sphi %s819_s12, %s1109_s12   ;;  %s757_s11 = sphi %s817_s11, %s1108_s11   ;;  %s753_s10 = sphi %s815_s10, %s1107_s10   ;;  %s749_s9 = sphi %s813_s9, %s1106_s9  }
   0xe   : > { %1079 = sst [smem:[#allocation12_spill]] %s781_s17  ;;  %s463_s21 = sadd.s32 4294967294, %s789_s19  }
   0xf   : > { %1080 = sst [smem:[#allocation13_spill]] %s785_s18  ;;  %s36_s22 = sadd.s32 1, %s781_s17 }
  0x10   : > { %s40_s23 = sadd.s32 1, %s785_s18  ;;  %p38_p0 = scmp.ge.s32.totalorder %s36_s22, 2 }
  0x11   : > { %s47_s24 = sadd.s32 1, %s769_s14  ;;  %p54_p1 = scmp.ne.s32.totalorder %s769_s14, %s765_s13 }
  0x12   : > { %p55_p2 = scmp.eq.s32.totalorder %s789_s19, 0  ;;  %s1112_s22 = smov (%p38_p0, %s36_s22), 0 }
  0x13   : > { %1081 = sst [smem:[#allocation14_spill]] %s1112_s22  ;;  %s1114_s23 = smov (!%p38_p0, %s40_s23), %s785_s18 }
  0x14   : > { %s44_s25 = ssub.s32 %s781_s17, %s1112_s22  ;;  %p881_p3 = por %p55_p2, %p54_p1 }
  0x15   : > { %p42_p4 = scmp.ge.s32.totalorder %s1114_s23, 2  ;;  %p45_p5 = scmp.eq.s32.totalorder %s44_s25, 0 }
  0x16   : > { %p60_p6 = scmp.ne.s32.totalorder %s765_s13, %s761_s12  ;;  %p886_p7 = scmp.eq.s32.totalorder %s462_s20, 0 }
  0x17   : > { %s1116_s23 = smov (%p42_p4, %s1114_s23), 0  ;;  %s77_s4 = sadd.s32 1, %s757_s11 }
  0x18   : > { %1084 = sst [smem:[#allocation15_spill]] %s1116_s23  ;;  %p897_p8 = por %p886_p7, %p60_p6 }
  0x19   : > { %s893_s28 = scalar_select %p45_p5, %s769_s14, %s47_s24  }
  0x1a   : > { %s70_s30 = ssub.s32 %s785_s18, %s1116_s23  ;;  %p84_p10 = scmp.ne.s32.totalorder %s757_s11, %s753_s10 }
  0x1b   : > { %1085 = sst [smem:[#allocation16_spill]] %s893_s28  ;;  %s72_s3 = sor.u32 %s70_s30, %s44_s25 }
  0x1c   : > { %p75_p9 = scmp.eq.s32.totalorder %s72_s3, 0  ;;  %p90_p11 = scmp.ne.s32.totalorder %s753_s10, %s749_s9 }
  0x1d   : > { %p118_p12 = scmp.eq.s32.totalorder %s462_s20, 3  ;;  %p913_p13 = por %p84_p10, %p55_p2 }
  0x1e   : > { %s909_s5 = scalar_select %p75_p9, %s757_s11, %s77_s4  }
  0x1f   : > { %p919_p0 = por %p90_p11, %p886_p7  ;;  %p923_p1 = por %p118_p12, %p84_p10 }
  0x20   : > { %1087 = sst [smem:[#allocation17_spill]] %s909_s5  ;;  %p124_p4 = scmp.eq.s32.totalorder %s463_s21, 3 }
  0x21   : > { %s1089_s7 = scalar_select %p919_p0, 1, 0 }
  0x22   : > { %s1090_s8 = scalar_select %p923_p1, 1, 0 }
  0x23   : > { %p511_p5 = scmp.lt.s32.totalorder %s789_s19, 4  ;;  %p928_p6 = por %p124_p4, %p90_p11 }
  0x24   : > { %s144_s20 = sand.u32 1, %s769_s14   ;;  %s467_s25 = sshll.u32 %s781_s17, 6 }
  0x25   : > { %s1091_s12 = scalar_select %p928_p6, 1, 0 }
  0x26   : > { %s466_s24 = sshll.u32 %s144_s20, 2  ;;  %s1092_s0 = sld [smem:[#allocation18_spill]] }
  0x27   : > { %s148_s4 = scalar_lea.vmem [#allocation2], %s466_s24  ;;  %p939_p2 = pnand %p511_p5, %p881_p3 }
  0x28   : > { %s155_s23 = sshll.u32 %s148_s4, 4  ;;  %p945_p7 = pnand %p511_p5, %p913_p13  ;;  %s156_s23 = int_to_ptr.vmem [resolvable:$true] %s155_s23 }
  0x29   : > { %p472_p9 = scmp.ge.s32.totalorder %s789_s19, 1  ;;  %p185_p10 = scmp.lt.s32.totalorder %s789_s19, 5 }
  0x2a   : > { %s145_s28 = scalar_lea.sflag [#allocation3], %s144_s20  ;;  %p611_p11 = pneg %p939_p2 }
  0x2b   : > { %s791_s26 = smov [#allocation2]  }
  0x2c   : > { %s153_s3 = scalar_lea.hbm %s1092_s0, %s467_s25  ;;  %s622_s25 = scalar_lea.vmem %s156_s23, 64 }
  0x2d   : > { %p623_p12 = scmp.ne.s32.totalorder %s156_s23, %s622_s25  ;;  %s627_s24 = sshll.u32 %s791_s26, 4  ;;  %s628_s24 = int_to_ptr.vmem [resolvable:$false] %s627_s24 }
  0x2e   : > { %s629_s27 = scalar_lea.vmem %s628_s24, 128  ;;  %p630_p3 = scmp.lt.s32.totalorder %s156_s23, %s628_s24 }
  0x2f   : > { %p625_p4 = pnand %p623_p12, %p611_p11  ;;  %p631_p1 = scmp.lt.s32.totalorder %s629_s27, %s622_s25 }
  0x31   : > { %p626_p6 = pneg %p625_p4  ;;  %p632_p0 = por %p631_p1, %p630_p3 }
  0x33   : > { %p633_p13 = pnand %p632_p0, %p626_p6 }
  0x35   : > { %636 = shalt.err (!%p633_p13)
}
  0x36   : > { %503 = dma.hbm_to_vmem [thread:$0]  (!%p939_p2), %s153_s3, 64, %s156_s23, %s145_s28  }
  0x37   : > { %p959_p5 = pnand %p472_p9, %p185_p10  ;;  %s162_s20 = sand.u32 1, %s757_s11  }
  0x38   : > { %s469_s30 = sshll.u32 %s781_s17, 1  ;;  %s468_s4 = sshll.u32 %s162_s20, 4 }
  0x39   : > { %s470_s25 = sshll.u32 %s785_s18, 2  ;;  %s166_s24 = scalar_lea.vmem [#allocation5], %s468_s4 }
  0x3a   : > { %s174_s26 = sadd.s32 %s470_s25, %s469_s30  ;;  %s177_s22 = sshll.u32 %s166_s24, 4  ;;  %s178_s22 = int_to_ptr.vmem [resolvable:$true] %s177_s22 }
  0x3b   : > { %s471_s27 = sshll.u32 %s174_s26, 7  ;;  %s163_s23 = scalar_lea.sflag [#allocation6], %s162_s20 }
  0x3c   : > { %s176_s5 = scalar_lea.hbm %s1068_s1, %s471_s27  ;;  %p639_p0 = pneg %p945_p7 }
  0x3d   : > { %s650_s28 = scalar_lea.vmem %s178_s22, 256  ;;  %s792_s3 = smov [#allocation5]  }
  0x3e   : > { %p651_p1 = scmp.ne.s32.totalorder %s178_s22, %s650_s28  ;;  %s655_s17 = sshll.u32 %s792_s3, 4  ;;  %s656_s17 = int_to_ptr.vmem [resolvable:$false] %s655_s17 }
  0x3f   : > { %s657_s18 = scalar_lea.vmem %s656_s17, 512  ;;  %p658_p9 = scmp.lt.s32.totalorder %s178_s22, %s656_s17 }
  0x40   : > { %p653_p6 = pnand %p651_p1, %p639_p0  ;;  %p659_p10 = scmp.lt.s32.totalorder %s657_s18, %s650_s28 }
  0x42   : > { %p654_p2 = pneg %p653_p6  ;;  %p660_p11 = por %p659_p10, %p658_p9 }
  0x44   : > { %p661_p12 = pnand %p660_p11, %p654_p2 }
  0x46   : > { %664 = shalt.err (!%p661_p12)
}
  0x47   : > { %s793_s30 = smov 128   ;;  %s794_s0 = smov 8  }
  0x48   : > { %506 = dma.hbm_to_vmem [thread:$0]  (!%p945_p7), %s176_s5, 256, %s178_s22, %s163_s23, %s793_s30, %s793_s30, %s794_s0  }
  0x49   : > { %189 = sbr.rel (%p959_p5) target bundleno = 457 (0x1c9), region = 28  ;;  %s191_s14 = sand.u32 (!%p959_p5), 1, %s765_s13  }
  0x4a   : > { %s976_s20 = sshll.u32 (!%p959_p5), %s191_s14, 2  ;;  %s192_s4 = scalar_lea.sflag (!%p959_p5), [#allocation3], %s191_s14 }
  0x4b   : > { %s195_s17 = scalar_lea.vmem (!%p959_p5), [#allocation2], %s976_s20 }
  0x4e   : > { %736 = dma.done.wait (%p897_p8), %s192_s4, 64  }
  0x4f   : > { %738 = vsyncadd (%p897_p8), %s192_s4, 4294967232  ;;  %s984_s18 = sand.u32 1, %s753_s10   ;;  %p1096_p7 = scmp.ne.s32.totalorder %s1089_s7, 0 }
  0x50   : > { %s474_s5 = sshll.u32 %s984_s18, 4  ;;  %s201_s21 = scalar_lea.sflag [#allocation6], %s984_s18 }
  0x51   : > { %s204_s6 = scalar_lea.vmem [#allocation5], %s474_s5 }
  0x52   : > { %740 = dma.done.wait (%p1096_p7), %s201_s21, 256  }
  0x53   : > { %742 = vsyncadd (%p1096_p7), %s201_s21, 4294967040  ;;  %v233_v0 = vld [vmem:[%s204_s6 + $0x8] sm:$0xff]  ;;  %vm236_vm0 = vcmask 130048   ;;  %v232_v1 = vld [vmem:[%s204_s6] sm:$0xff]  ;;  %v795_v6 = vmov 0.0   ;;  %vm796_vm1 = vmmov 0  }
  0x54   : > { %v235_v2 = vmul.f32 %v233_v0, %v233_v0  ;;  %v234_v3 = vmul.f32 %v232_v1, %v232_v1  ;;  %487 = vmatprep.subr.mxu0 %v795_v6  ;;  %491 = vmatprep.mubr.msk.f32.mxu0 %vm796_vm1, %v795_v6  ;;  %v231_v15 = vld [vmem:[%s195_s17] sm:$0xf]  ;;  %s475_s29 = sshll.u32 %s984_s18, 2  ;;  %s480_s7 = sshll.u32 %s777_s16, 1  ;;  %vm328_vm2 = vcmask 125952  }
  0x55   : > { %s343_s25 = sadd.s32 %s773_s15, %s480_s7  ;;  %s229_s24 = scalar_lea.vmem [#allocation7], %s475_s29 }
  0x56   : > { %v240_v4 = vsel %vm236_vm0, %v235_v2, 0.0  ;;  %v237_v5 = vsel %vm236_vm0, %v234_v3, 0.0  ;;  %s481_s26 = sshll.u32 %s343_s25, 6  ;;  %s347_s22 = sshll.u32 %s229_s24, 4  ;;  %s1007_s22 = int_to_ptr.vmem [resolvable:$true] %s347_s22 }
  0x57   : > { %241 = vadd.xlane.f32.xlu0 %v240_v4  ;;  %s1005_s28 = scalar_lea.hbm %s1069_s2, %s481_s26  ;;  %s331_s3 = scalar_lea.sflag [#allocation4], %s984_s18 }
  0x58   : > { %s665_s16 = scalar_lea.vmem %s1007_s22, 64  ;;  %p1097_p4 = scmp.ne.s32.totalorder %s1090_s8, 0 }
  0x59   : > { %p666_p8 = scmp.ne.s32.totalorder %s1007_s22, %s665_s16  ;;  %s797_s15 = smov [#allocation7]  }
  0x5a   : > { %s669_s30 = sshll.u32 %s797_s15, 4  ;;  %s670_s30 = int_to_ptr.vmem [resolvable:$false] %s669_s30 }
  0x5b   : > { %238 = vadd.xlane.f32.xlu0 %v237_v5  ;;  %p667_p3 = pnand %p666_p8, %p1097_p4  ;;  %s671_s0 = scalar_lea.vmem %s670_s30, 128 }
  0x5c   : > { %p672_p5 = scmp.lt.s32.totalorder %s1007_s22, %s670_s30  ;;  %p673_p0 = scmp.lt.s32.totalorder %s671_s0, %s665_s16 }
  0x5d   : > { %p668_p13 = pneg %p667_p3 }
  0x5e   : > { %p674_p1 = por %p673_p0, %p672_p5 }
  0x60   : > { %p675_p6 = pnand %p674_p1, %p668_p13 }
  0xe0   : > { %v242_v7 = vpop.xlane.xlu0 %241 }
  0xe1   : > { %v244_v8 = vmax.f32 %v242_v7, 1e-24 }
  0xe3   : > { %605 = vrsqrt.f32 %v244_v8 }
  0xe4   : > { %v239_v9 = vpop.xlane.xlu0 %238 }
  0xe5   : > { %v243_v10 = vmax.f32 %v239_v9, 1e-24 }
  0xe7   : > { %607 = vrsqrt.f32 %v243_v10 }
  0xf0   : > { %v606_v11 = vpop.eup %605 }
  0xf1   : > { %v248_v12 = vmul.f32 %v606_v11, %v233_v0 }
  0xf3   : > { %488 = vmatpush3.xpose.msk.msra.mxu0 %vm236_vm0, %v248_v12 }
  0xf4   : > { %v608_v13 = vpop.eup %607  ;;  %489 = vmatprep.subr.mxu0 %v795_v6 }
  0xf5   : > { %v247_v14 = vmul.f32 %v608_v13, %v232_v1 }
  0xf7   : > { %490 = vmatpush3.xpose.msk.msra.mxu0 %vm236_vm0, %v247_v14 }
  0xfa   : > { %492 = vmatmul.mubr.msk.f32.vlgmr.msra.gmra.mxu0 %vm236_vm0, %v231_v15 }
 0x1ba   : > { %v324_v16 = vpop.f32.mrf.mxu0 }
 0x1bb   : > { %329 = vst.msk [vmem:[%s229_s24] sm:$0xf] %vm328_vm2, %v324_v16 }
 0x1bc   : > { %v493_v17 = vpop.f32.mrf.mxu0 }
 0x1bd   : > { %678 = shalt.err (!%p675_p6)
}
 0x1be   : > { %s679_s14 = scalar_lea.hbm %s1005_s28, 64  ;;  %s683_s17 = scalar_lea.hbm %s1069_s2, 256 }
 0x1bf   : > { %p680_p2 = scmp.ne.s32.totalorder %s1005_s28, %s679_s14  ;;  %p684_p11 = scmp.lt.s32.totalorder %s1005_s28, %s1069_s2 }
 0x1c0   : > { %p685_p12 = scmp.lt.s32.totalorder %s683_s17, %s679_s14 }
 0x1c1   : > { %p681_p9 = pnand %p680_p2, %p1097_p4 }
 0x1c2   : > { %p686_p7 = por %p685_p12, %p684_p11 }
 0x1c3   : > { %p682_p10 = pneg %p681_p9 }
 0x1c5   : > { %p687_p8 = pnand %p686_p7, %p682_p10 }
 0x1c7   : > { %690 = shalt.err (!%p687_p8)
}
 0x1c8   : > { %498 = dma.vmem_to_hbm [thread:$0]  (%p1097_p4), %s1007_s22, 64, %s1005_s28, %s331_s3  }
 0x1c9 PF: > { %p512_p3 = scmp.ge.s32.totalorder %s789_s19, 2  ;;  %s359_s21 = sand.u32 1, %s749_s9  }
 0x1ca   : > { %p1098_p13 = scmp.ne.s32.totalorder %s1091_s12, 0  ;;  %s360_s6 = scalar_lea.sflag [#allocation4], %s359_s21 }
 0x1cc   : > { %p508_p5 = pnand %p512_p3, %p1098_p13 }
 0x1ce   : > { %p509_p0 = pneg %p508_p5 }
 0x1d0   : > { %744 = dma.done.wait (%p509_p0), %s360_s6, 64  }
 0x1d1   : > { %746 = vsyncadd (%p509_p0), %s360_s6, 4294967232  ;;  %s21_s19 = sadd.s32 1, %s789_s19   ;;  %s1099_s8 = sld [smem:[#allocation17_spill]] }
 0x1d2   : > { %p18_p1 = scmp.ge.s32.totalorder %s21_s19, 6   ;;  %s1100_s29 = sld [smem:[#allocation11_spill]] }
 0x1d3   : > { %s1101_s14 = sld [smem:[#allocation16_spill]]  ;;  %s1106_s9 = smov %s753_s10 }
 0x1d4   : > { %s1102_s15 = sld [smem:[#allocation12_spill]]  ;;  %s1107_s10 = smov %s757_s11 }
 0x1d5   : > { %s1103_s16 = sld [smem:[#allocation13_spill]]  ;;  %s1109_s12 = smov %s765_s13 }
 0x1d6   : > { %s1104_s17 = sld [smem:[#allocation14_spill]]  ;;  %20 = sbr.rel (!%p18_p1) target bundleno = 13 (0xd), region = 86 }
 0x1d7   : > { %s1105_s18 = sld [smem:[#allocation15_spill]]  ;;  %s1108_s11 = smov %s1099_s8 }
 0x1d8   : > { %s1110_s13 = smov %s1100_s29 }
 0x1db   :  { %365 = vsyncpa [#allocation3], 1 }
 0x1dc   :  { %367 = vsyncpa [#allocation3 + $0x1], 1 }
 0x1dd   :  { %368 = vsyncpa [#allocation6], 1 }
 0x1de   :  { %370 = vsyncpa [#allocation6 + $0x1], 1 }
 0x1df   :  { %371 = vsyncpa [#allocation4], 1 }
 0x1e0   :  { %373 = vsyncpa [#allocation4 + $0x1], 1 }

</bundles_post_ra>
